<compile_context>
chip_gen: v7x
topology: tpu7x:2x2x1
jax: 0.10.0
libtpu: 0.0.40
codegen_flags: <defaults>
</compile_context>

<pallas_src>
import jax
import jax.numpy as jnp
from jax.experimental import pallas as pl
from jax.experimental.pallas import tpu as pltpu


LANE_W = 1024                       # lane-dense last dim (multiple of 128)
TARGET_BLOCK_BYTES = 4 * 1024 * 1024   # ~4 MiB per block (good on v6e/v7x)
MIN_BLOCK_BYTES = 1 * 1024 * 1024      # don't shrink blocks below ~1 MiB/step
MIN_GRID_STEPS = 8                  # aim for >= 4 steps per TC on v7x
SMALL_INPUT_BYTES = 2 * 1024 * 1024    # below this, plain XLA x*2-1 is faster


def _normalize_kernel(x_ref, o_ref):
    # Elementwise hot path on the VPU; weak-typed literals keep the dtype.
    o_ref[...] = x_ref[...] * 2 - 1


def _ceil_div(a, b):
    return -(-a // b)


def _round_up(a, m):
    return _ceil_div(a, m) * m


def _sublane_multiple(dtype):
    # (8,128) tiling for 4-byte dtypes, (16,128) for 2-byte, (32,128) for 1-byte.
    itemsize = jnp.dtype(dtype).itemsize
    return max(8, 32 // itemsize)


def normalize_transform(x, *, force_pallas=False, donate_input=False):
    """JAX/Pallas equivalent of NormalizeTransform.forward (returns new array).

    Note: like the PyTorch module, arithmetic is done in the input dtype; the
    transform is only meaningful for floating inputs in [0, 1].
    """
    orig_shape = x.shape
    dtype = x.dtype
    n = x.size
    itemsize = jnp.dtype(dtype).itemsize

    if n == 0:
        return x

    if not force_pallas and n * itemsize < SMALL_INPUT_BYTES:
        # Tiny tensors: a pallas_call launch costs more than XLA fusion.
        return x * 2 - 1

    xf = x.reshape(-1)

    # Pad only a sub-row tail (< LANE_W elements). Aligned inputs (typical
    # image shapes) skip the pad and the trailing slice entirely.
    padded_n = _ceil_div(n, LANE_W) * LANE_W
    if padded_n != n:
        # TODO(synk): misaligned tails pay one extra pad + slice HBM pass.
        xf = jnp.pad(xf, (0, padded_n - n))

    rows = padded_n // LANE_W
    x2d = xf.reshape(rows, LANE_W)

    # Byte-budget row tile, rounded to the sublane multiple. Keep at least
    # MIN_GRID_STEPS grid steps (v7x 2-TC sharding + pipelining) but never
    # shrink a block below ~1 MiB (small tiles expose per-step overhead).
    sub = _sublane_multiple(dtype)
    row_bytes = LANE_W * itemsize
    budget_rows = max(sub, (TARGET_BLOCK_BYTES // row_bytes) // sub * sub)
    floor_rows = max(sub, (MIN_BLOCK_BYTES // row_bytes) // sub * sub)
    tm = min(budget_rows,
             max(floor_rows, _round_up(_ceil_div(rows, MIN_GRID_STEPS), sub)))
    if tm >= rows:
        tm = rows          # single full-extent block (always legal)
    grid = (_ceil_div(rows, tm),)   # partial last block is masked by Pallas

    extra = {}
    if donate_input:
        # No bandwidth change, but lets XLA reuse the input buffer if donated.
        extra["input_output_aliases"] = {0: 0}

    out2d = pl.pallas_call(
        _normalize_kernel,
        out_shape=jax.ShapeDtypeStruct((rows, LANE_W), dtype),
        grid=grid,
        in_specs=[pl.BlockSpec((tm, LANE_W), lambda i: (i, 0))],
        out_specs=pl.BlockSpec((tm, LANE_W), lambda i: (i, 0)),
        compiler_params=pltpu.CompilerParams(
            dimension_semantics=("parallel",),       # 2-TC sharding on v7x
            vmem_limit_bytes=40 * 1024 * 1024,       # 4x 4 MiB blocks + margin
        ),
        **extra,
    )(x2d)

    out = out2d.reshape(-1)
    if padded_n != n:
        out = out[:n]
    return out.reshape(orig_shape)


if __name__ == "__main__":
    key = jax.random.PRNGKey(0)

    # Small NCHW input consistent with a typical image-transform use; force
    # the Pallas path so the kernel itself is exercised at this size.
    x = jax.random.uniform(key, (2, 4, 16, 16), dtype=jnp.float32)
    y = normalize_transform(x, force_pallas=True)
    jax.block_until_ready(y)
    assert y.shape == x.shape and y.dtype == x.dtype
    assert jnp.allclose(y, x * 2 - 1, atol=1e-6), "mismatch (small, forced)"

    # Default dispatch for the same tiny input (XLA fallback path).
    y_small = normalize_transform(x)
    jax.block_until_ready(y_small)
    assert jnp.allclose(y_small, x * 2 - 1, atol=1e-6), "mismatch (small, xla)"

    # Larger aligned batch: no padding, no slicing, multi-step grid.
    x2 = jax.random.uniform(jax.random.PRNGKey(1), (4, 3, 256, 256),
                            dtype=jnp.float32)
    y2 = normalize_transform(x2)
    jax.block_until_ready(y2)
    assert jnp.allclose(y2, x2 * 2 - 1, atol=1e-6), "mismatch (big, aligned)"

    # Misaligned tail (n % 1024 != 0) forced through the kernel's pad path.
    x3 = jax.random.uniform(jax.random.PRNGKey(2), (3, 7, 50),
                            dtype=jnp.float32)
    y3 = normalize_transform(x3, force_pallas=True)
    jax.block_until_ready(y3)
    assert jnp.allclose(y3, x3 * 2 - 1, atol=1e-6), "mismatch (misaligned)"

    print("KERNEL_OK")
</pallas_src>

<mosaic_0001>
module attributes {stable_mosaic.version = 11 : i64} {
  func.func @_normalize_kernel(%arg0: i32, %arg1: memref<2x1024xf32, #tpu.memory_space<vmem>>, %arg2: memref<2x1024xf32, #tpu.memory_space<vmem>>) attributes {dimension_semantics = [#tpu.dimension_semantics<parallel>], iteration_bounds = array<i64: 1>, scalar_prefetch = 0 : i64, scratch_operands = 0 : i64, tpu.core_type = #tpu.core_type<tc>, window_params = [{transform_indices = @transform_0, window_bounds = array<i64: 2, 1024>}, {transform_indices = @transform_1, window_bounds = array<i64: 2, 1024>}]} {
    %c0 = arith.constant 0 : index
    %c0_0 = arith.constant 0 : index
    %0 = vector.load %arg1[%c0, %c0_0] : memref<2x1024xf32, #tpu.memory_space<vmem>>, vector<2x1024xf32>
    %cst = arith.constant 2.000000e+00 : f32
    %1 = vector.broadcast %cst : f32 to vector<2x1024xf32>
    %2 = arith.mulf %0, %1 : vector<2x1024xf32>
    %cst_1 = arith.constant 1.000000e+00 : f32
    %3 = vector.broadcast %cst_1 : f32 to vector<2x1024xf32>
    %4 = arith.subf %2, %3 : vector<2x1024xf32>
    %c0_2 = arith.constant 0 : index
    %c0_3 = arith.constant 0 : index
    %5 = vector.load %arg2[%c0_2, %c0_3] : memref<2x1024xf32, #tpu.memory_space<vmem>>, vector<2x1024xf32>
    tpu.vector_store %arg2[%c0_2, %c0_3], %4 {strides = array<i32>} : memref<2x1024xf32, #tpu.memory_space<vmem>>, vector<2x1024xf32>,
    return
  }
  func.func @transform_0(%arg0: i32) -> (i32, i32) {
    %c0_i32 = arith.constant 0 : i32
    %c0_i32_0 = arith.constant 0 : i32
    return %arg0, %c0_i32 : i32, i32
  }
  func.func @transform_1(%arg0: i32) -> (i32, i32) {
    %c0_i32 = arith.constant 0 : i32
    %c0_i32_0 = arith.constant 0 : i32
    return %arg0, %c0_i32 : i32, i32
  }
}

</mosaic_0001>

<bundles_post_ra>
// kernel: tpu_custom_call.1
= control target key start
LH: loop header
LB: loop body
LE: loop exit
PB: predicated region body
PF: predicated region fallthrough
CT: control target
= control target key end

     0   :  { %6 = vsyncpa [#allocation3], 0  ;;  %s132_s0 = inlined_call_operand.hbm [shape: f32[2,1024], index: 0, kind: input, shape index: {}]   ;;  %s133_s1 = inlined_call_operand.hbm [shape: f32[2,1024], index: 1, kind: output, shape index: {}]  }
   0x1   :  { %7 = vsyncpa [#allocation4], 0  ;;  %s96_s6 = smov [#allocation2]   ;;  %s48_s10 = scalar_lea.hbm %s132_s0, 256 }
   0x2   :  { %s14_s7 = sshll.u32 %s96_s6, 4  ;;  %p49_p0 = scmp.ne.s32.totalorder %s132_s0, %s48_s10  ;;  %s15_s7 = int_to_ptr.vmem [resolvable:$true] %s14_s7 }
   0x3   :  { %p52_p1 = scmp.lt.u32.totalorder %s48_s10, %s132_s0 }
   0x5   :  { %p54_p2 = pnand %p52_p1, %p49_p0 }
   0x7   :  { %57 = shalt.err (!%p54_p2)
}
   0x8   :  { %s58_s15 = scalar_lea.vmem %s15_s7, 256  ;;  %p63_p4 = scmp.lt.s32.totalorder %s15_s7, %s15_s7 }
   0x9   :  { %p59_p3 = scmp.ne.s32.totalorder %s15_s7, %s58_s15  ;;  %p64_p5 = scmp.lt.s32.totalorder %s58_s15, %s58_s15 }
   0xb   :  { %p65_p6 = por %p64_p5, %p63_p4 }
   0xd   :  { %p66_p7 = pnand %p65_p6, %p59_p3 }
   0xf   :  { %69 = shalt.err (!%p66_p7)
}
  0x10   :  { %17 = dma.hbm_to_vmem [thread:$0]  %s132_s0, 256, %s15_s7, [#allocation3]  }
  0x11   :  { %92 = dma.done.wait [#allocation3], 256  }
  0x12   :  { %93 = vsyncadd [#allocation3], 4294967040  ;;  %v21_v0 = vld [vmem:[#allocation2] sm:$0xff]  ;;  %v22_v1 = vld [vmem:[#allocation2 + $0x8] sm:$0xff]  ;;  %s97_s18 = smov [#allocation5]  }
  0x13   :  { %s35_s19 = sshll.u32 %s97_s18, 4  ;;  %v23_v2 = vmul.f32 2.0, %v21_v0  ;;  %v24_v3 = vmul.f32 2.0, %v22_v1  ;;  %s36_s19 = int_to_ptr.vmem [resolvable:$true] %s35_s19 }
  0x14   :  { %s70_s20 = scalar_lea.vmem %s36_s19, 256  ;;  %p75_p9 = scmp.lt.s32.totalorder %s36_s19, %s36_s19 }
  0x15   :  { %v44_v4 = vadd.f32 -1.0, %v23_v2  ;;  %v45_v5 = vadd.f32 -1.0, %v24_v3  ;;  %p71_p8 = scmp.ne.s32.totalorder %s36_s19, %s70_s20  ;;  %p76_p10 = scmp.lt.s32.totalorder %s70_s20, %s70_s20 }
  0x17   :  { %27 = vst [vmem:[#allocation5] sm:$0xff] %v44_v4  ;;  %28 = vst [vmem:[#allocation5 + $0x8] sm:$0xff] %v45_v5  ;;  %p77_p11 = por %p76_p10, %p75_p9 }
  0x19   :  { %p78_p12 = pnand %p77_p11, %p71_p8 }
  0x1b   :  { %81 = shalt.err (!%p78_p12)
}
  0x1c   :  { %s82_s22 = scalar_lea.hbm %s133_s1, 256 }
  0x1d   :  { %p83_p13 = scmp.ne.s32.totalorder %s133_s1, %s82_s22  ;;  %p86_p0 = scmp.lt.u32.totalorder %s82_s22, %s133_s1 }
  0x1f   :  { %p88_p1 = pnand %p86_p0, %p83_p13 }
  0x21   :  { %91 = shalt.err (!%p88_p1)
}
  0x22   :  { %38 = dma.vmem_to_hbm [thread:$0]  %s36_s19, 256, %s133_s1, [#allocation4]  }
  0x23   :  { %94 = dma.done.wait [#allocation4], 256  }
  0x24   :  { %95 = vsyncadd [#allocation4], 4294967040 }
  0x25   :  { %42 = vsyncpa [#allocation3], 1 }
  0x26   :  { %43 = vsyncpa [#allocation4], 1 }

</bundles_post_ra>
